<compile_context>
chip_gen: v7x
topology: tpu7x:2x2x1
jax: 0.10.0
libtpu: 0.0.40
codegen_flags: <defaults>
</compile_context>

<pallas_src>
import functools

import jax
import jax.numpy as jnp
from jax import lax
from jax.experimental import pallas as pl
from jax.experimental.pallas import tpu as pltpu


LMBD0 = 0.001
LMBD1 = 1.0
LMBD2 = 0.001
ALPHA = 1.0


def _cdiv(a, b):
    return -(-a // b)


def _round_up(a, b):
    return _cdiv(a, b) * b


def _sdh_agg_kernel(lbl_ref, u_ref, agg_ref, acc_ref, *, num_classes):
    """Accumulate M_ext = [Y | 1]^T [tanh(U), tanh(U)^2, |tanh(U)|, 1] over row blocks."""
    r = pl.program_id(1)

    @pl.when(r == 0)
    def _():
        acc_ref[...] = jnp.zeros_like(acc_ref)

    u = jnp.tanh(u_ref[...].astype(jnp.float32))          # (tn, nbit)
    tn = u.shape[0]

    # labels: (tn, 1) int32; padded rows hold `num_classes` (out of range) so the
    # one-hot columns stay zero.  Column C of lhs is an all-ones aggregation row.
    lbl = lbl_ref[...]
    iota = lax.broadcasted_iota(jnp.int32, (tn, num_classes + 1), 1)
    lhs = ((iota == lbl) | (iota == num_classes)).astype(jnp.float32)   # (tn, C+1)

    ones = jnp.ones((tn, 1), jnp.float32)
    rhs = jnp.concatenate([u, u * u, jnp.abs(u), ones], axis=1)         # (tn, 3*nbit+1)

    # Single MXU contraction over the batch axis (K = tn).
    acc_ref[...] += lax.dot_general(
        lhs, rhs, (((0,), (0,)), ((), ())),
        preferred_element_type=jnp.float32)

    @pl.when(r == pl.num_programs(1) - 1)
    def _():
        agg_ref[0] = acc_ref[...]


def sdh_loss_pallas(u, labels, w,
                    lmbd0=LMBD0, lmbd1=LMBD1, lmbd2=LMBD2, alpha=ALPHA,
                    *, row_block=512, num_splits=2):
    """SDH loss from integer class labels (the optimized entry point)."""
    n, nbit = u.shape
    nbit_w, c = w.shape
    assert nbit_w == nbit, "weight must be (nbit, C)"
    labels = labels.reshape(n).astype(jnp.int32)

    # ---- tiling: 2-way parallel split (v7x megacore) x row-block reduction ----
    rows_per_split = _cdiv(n, num_splits)
    tn = min(_round_up(row_block, 8), _round_up(rows_per_split, 8))
    r_blocks = _cdiv(rows_per_split, tn)
    padded = num_splits * r_blocks * tn

    u_p = jnp.zeros((padded, nbit), u.dtype).at[:n].set(u)
    lbl_p = jnp.full((padded, 1), c, jnp.int32).at[:n, 0].set(labels)

    width = 3 * nbit + 1
    kernel = functools.partial(_sdh_agg_kernel, num_classes=c)

    parts = pl.pallas_call(
        kernel,
        out_shape=jax.ShapeDtypeStruct((num_splits, c + 1, width), jnp.float32),
        grid_spec=pltpu.PrefetchScalarGridSpec(
            num_scalar_prefetch=0,
            grid=(num_splits, r_blocks),
            in_specs=[
                pl.BlockSpec((tn, 1), lambda s, r: (s * r_blocks + r, 0)),
                pl.BlockSpec((tn, nbit), lambda s, r: (s * r_blocks + r, 0)),
            ],
            out_specs=pl.BlockSpec((1, c + 1, width), lambda s, r: (s, 0, 0)),
            scratch_shapes=[pltpu.VMEM((c + 1, width), jnp.float32)],
        ),
        compiler_params=pltpu.CompilerParams(
            dimension_semantics=("parallel", "arbitrary"),
            vmem_limit_bytes=32 * 1024 * 1024,   # safe on v5e/v6e/v7x; tiles are tiny
        ),
    )(lbl_p, u_p)

    # ---- combine per-core partials + tiny nonlinear finalization (wrapper) ----
    agg = jnp.sum(parts, axis=0)                       # (C+1, 3*nbit+1)

    m = agg[:c, :nbit]                                 # Y^T U            (C, nbit)
    s2 = agg[:c, nbit:2 * nbit]                        # Y^T (U*U)        (C, nbit)
    counts = agg[:c, 3 * nbit]                         # n_c              (C,)
    ucol = agg[c, :nbit]                               # sum_i u_i        (nbit,)
    sum_uu = jnp.sum(agg[c, nbit:2 * nbit])            # sum u^2
    sum_abs = jnp.sum(agg[c, 2 * nbit:3 * nbit])       # sum |u|

    n_f = float(n)
    # j1 = mean_i sum_k (u - sign(u))^2  with |tanh|<1:  u^2 - 2|u| + 1
    j1 = (sum_uu - 2.0 * sum_abs + n_f * float(nbit)) / n_f
    j2_1 = sum_uu
    t_c = jnp.sum(s2, axis=1)                          # per-class sum of ||u_i||^2
    posn = jnp.sum(counts * counts)
    negn = n_f * n_f - posn
    s_pos = 2.0 * jnp.sum(counts * t_c) - 2.0 * jnp.sum(m * m)
    s_all = 2.0 * n_f * sum_uu - 2.0 * jnp.sum(ucol * ucol)
    s_neg = s_all - s_pos
    j2_2 = s_neg / (negn + 1e-7) - s_pos / (posn + 1e-7)
    j2 = (j2_1 + alpha * j2_2) / 2.0

    wf = w.astype(jnp.float32)
    ortho = wf @ wf.T                                  # (nbit, nbit), K=C: trivial, done once
    j3 = jnp.sum((ortho - 1.0) ** 2) / 2.0

    return lmbd0 * j1 - lmbd1 * j2 + lmbd2 * j3


def sdh_loss_pallas_onehot(u, y, w, **kwargs):
    """Interface-compatible entry point taking a one-hot y like the PyTorch module."""
    labels = jnp.argmax(y, axis=1).astype(jnp.int32)
    return sdh_loss_pallas(u, labels, w, **kwargs)


def sdh_loss_reference(u, y, w, lmbd0=LMBD0, lmbd1=LMBD1, lmbd2=LMBD2, alpha=ALPHA):
    """Pure-JAX reference mirroring the PyTorch code line-by-line (O(N^2 nbit^2))."""
    u = jnp.tanh(u.astype(jnp.float32))
    y = y.astype(jnp.float32)
    w = w.astype(jnp.float32)
    n = u.shape[0]

    sim = (y @ y.T > 0).astype(jnp.float32)
    j1 = jnp.mean(jnp.sum((u - jnp.sign(u)) ** 2, axis=1))
    j2_1 = jnp.trace(u.T @ u)

    hdiff = u[None, :, :] - u[:, None, :]                        # (N, N, nbit)
    hdiff = hdiff[:, :, :, None] @ hdiff[:, :, None, :]          # (N, N, nbit, nbit)
    posn = jnp.sum((sim > 0).astype(jnp.float32))
    negn = jnp.sum((sim <= 0).astype(jnp.float32))
    sim4 = sim.reshape(n, n, 1, 1)
    hpos = jnp.sum(hdiff * sim4, axis=(0, 1)) / (posn + 1e-7)
    hneg = jnp.sum(hdiff * (1.0 - sim4), axis=(0, 1)) / (negn + 1e-7)
    j2_2 = jnp.trace(hneg - hpos)
    j2 = (j2_1 + alpha * j2_2) / 2.0

    ortho = w @ w.T
    j3 = jnp.sum((ortho - jnp.ones_like(ortho)) ** 2) / 2.0
    return lmbd0 * j1 - lmbd1 * j2 + lmbd2 * j3


if __name__ == "__main__":
    key = jax.random.PRNGKey(0)
    k_u, k_lbl, k_w = jax.random.split(key, 3)

    N, NBIT, C = 24, 16, 4

    u = jax.random.normal(k_u, (N, NBIT), dtype=jnp.float32)
    labels = jax.random.randint(k_lbl, (N,), 0, C)
    y = jax.nn.one_hot(labels, C, dtype=jnp.float32)
    # Deterministic synthetic classifier weight (the module's `self.weight`).
    w = 0.1 * jax.random.normal(k_w, (NBIT, C), dtype=jnp.float32)

    ref = jax.block_until_ready(sdh_loss_reference(u, y, w))

    # Small row_block exercises multi-step accumulation + zero-padding + both splits.
    loss = jax.block_until_ready(sdh_loss_pallas(u, labels, w, row_block=8))
    assert jnp.allclose(loss, ref, rtol=1e-3, atol=1e-3), (loss, ref)

    # One-hot interface path with the default (large-tile) configuration.
    loss2 = jax.block_until_ready(sdh_loss_pallas_onehot(u, y, w))
    assert jnp.allclose(loss2, ref, rtol=1e-3, atol=1e-3), (loss2, ref)

    print("KERNEL_OK")
</pallas_src>

<mosaic_0001>
module attributes {stable_mosaic.version = 11 : i64} {
  func.func @_sdh_agg_kernel(%arg0: i32, %arg1: i32, %arg2: memref<8x1xi32, #tpu.memory_space<vmem>>, %arg3: memref<8x16xf32, #tpu.memory_space<vmem>>, %arg4: memref<1x5x49xf32, #tpu.memory_space<vmem>>, %arg5: memref<5x49xf32, #tpu.memory_space<vmem>>) attributes {dimension_semantics = [#tpu.dimension_semantics<parallel>, #tpu.dimension_semantics<arbitrary>], iteration_bounds = array<i64: 2, 2>, scalar_prefetch = 0 : i64, scratch_operands = 1 : i64, tpu.core_type = #tpu.core_type<tc>, window_params = [{transform_indices = @transform_0, window_bounds = array<i64: 8, 1>}, {transform_indices = @transform_1, window_bounds = array<i64: 8, 16>}, {transform_indices = @transform_2, window_bounds = array<i64: 1, 5, 49>}]} {
    %c0_i32 = arith.constant 0 : i32
    %0 = arith.cmpi eq, %arg1, %c0_i32 : i32
    %1 = arith.extui %0 : i1 to i32
    %c0_i32_0 = arith.constant 0 : i32
    %2 = arith.cmpi ne, %1, %c0_i32_0 : i32
    scf.if %2 {
      %cst_10 = arith.constant 0.000000e+00 : f32
      %25 = vector.broadcast %cst_10 : f32 to vector<5x49xf32>
      %c0_11 = arith.constant 0 : index
      %c0_12 = arith.constant 0 : index
      %26 = vector.load %arg5[%c0_11, %c0_12] : memref<5x49xf32, #tpu.memory_space<vmem>>, vector<5x49xf32>
      tpu.vector_store %arg5[%c0_11, %c0_12], %25 {strides = array<i32>} : memref<5x49xf32, #tpu.memory_space<vmem>>, vector<5x49xf32>,
    } else {
    }
    %c0 = arith.constant 0 : index
    %c0_1 = arith.constant 0 : index
    %3 = vector.load %arg3[%c0, %c0_1] : memref<8x16xf32, #tpu.memory_space<vmem>>, vector<8x16xf32>
    %4 = math.tanh %3 : vector<8x16xf32>
    %c0_2 = arith.constant 0 : index
    %c0_3 = arith.constant 0 : index
    %5 = vector.load %arg2[%c0_2, %c0_3] : memref<8x1xi32, #tpu.memory_space<vmem>>, vector<8x1xi32>
    %6 = tpu.iota {dimensions = array<i32: 1>} : vector<8x5xi32>
    %7 = vector.broadcast %5 : vector<8x1xi32> to vector<8x5xi32>
    %8 = arith.cmpi eq, %6, %7 : vector<8x5xi32>
    %c4_i32 = arith.constant 4 : i32
    %9 = vector.broadcast %c4_i32 : i32 to vector<8x5xi32>
    %10 = arith.cmpi eq, %6, %9 : vector<8x5xi32>
    %11 = arith.ori %8, %10 : vector<8x5xi1>
    %12 = arith.extui %11 : vector<8x5xi1> to vector<8x5xi32>
    %13 = arith.sitofp %12 : vector<8x5xi32> to vector<8x5xf32>
    %cst = arith.constant 1.000000e+00 : f32
    %14 = vector.broadcast %cst : f32 to vector<8x1xf32>
    %15 = arith.mulf %4, %4 : vector<8x16xf32>
    %16 = math.absf %4 : vector<8x16xf32>
    %17 = tpu.concatenate %4, %15, %16, %14 in 1 : vector<8x16xf32>, vector<8x16xf32>, vector<8x16xf32>, vector<8x1xf32> -> vector<8x49xf32>
    %c0_4 = arith.constant 0 : index
    %c0_5 = arith.constant 0 : index
    %18 = vector.load %arg5[%c0_4, %c0_5] : memref<5x49xf32, #tpu.memory_space<vmem>>, vector<5x49xf32>
    %cst_6 = arith.constant dense<0.000000e+00> : vector<5x49xf32>
    %19 = tpu.matmul %13, %17, %cst_6 {dimension_numbers = #tpu.dot_dimension_numbers<[0], [0], [1], [1], [0, 1, 1, 1], [], []>} : vector<8x5xf32>, vector<8x49xf32>, vector<5x49xf32> -> vector<5x49xf32>
    %20 = arith.addf %18, %19 : vector<5x49xf32>
    %c0_7 = arith.constant 0 : index
    %c0_8 = arith.constant 0 : index
    %21 = vector.load %arg5[%c0_7, %c0_8] : memref<5x49xf32, #tpu.memory_space<vmem>>, vector<5x49xf32>
    tpu.vector_store %arg5[%c0_7, %c0_8], %20 {strides = array<i32>} : memref<5x49xf32, #tpu.memory_space<vmem>>, vector<5x49xf32>,
    %c1_i32 = arith.constant 1 : i32
    %22 = arith.cmpi eq, %arg1, %c1_i32 : i32
    %23 = arith.extui %22 : i1 to i32
    %c0_i32_9 = arith.constant 0 : i32
    %24 = arith.cmpi ne, %23, %c0_i32_9 : i32
    scf.if %24 {
      %c0_10 = arith.constant 0 : index
      %c0_11 = arith.constant 0 : index
      %25 = vector.load %arg5[%c0_10, %c0_11] : memref<5x49xf32, #tpu.memory_space<vmem>>, vector<5x49xf32>
      %c0_12 = arith.constant 0 : index
      %c0_13 = arith.constant 0 : index
      %c0_14 = arith.constant 0 : index
      %26 = vector.load %arg4[%c0_12, %c0_13, %c0_14] : memref<1x5x49xf32, #tpu.memory_space<vmem>>, vector<1x5x49xf32>
      %27 = vector.shape_cast %26 : vector<1x5x49xf32> to vector<5x49xf32>
      %28 = vector.shape_cast %25 : vector<5x49xf32> to vector<1x5x49xf32>
      tpu.vector_store %arg4[%c0_12, %c0_13, %c0_14], %28 {strides = array<i32>} : memref<1x5x49xf32, #tpu.memory_space<vmem>>, vector<1x5x49xf32>,
    } else {
    }
    return
  }
  func.func @transform_0(%arg0: i32, %arg1: i32) -> (i32, i32) {
    %c2_i32 = arith.constant 2 : i32
    %0 = arith.muli %arg0, %c2_i32 : i32
    %1 = arith.addi %0, %arg1 : i32
    %c0_i32 = arith.constant 0 : i32
    %c0_i32_0 = arith.constant 0 : i32
    return %1, %c0_i32 : i32, i32
  }
  func.func @transform_1(%arg0: i32, %arg1: i32) -> (i32, i32) {
    %c2_i32 = arith.constant 2 : i32
    %0 = arith.muli %arg0, %c2_i32 : i32
    %1 = arith.addi %0, %arg1 : i32
    %c0_i32 = arith.constant 0 : i32
    %c0_i32_0 = arith.constant 0 : i32
    return %1, %c0_i32 : i32, i32
  }
  func.func @transform_2(%arg0: i32, %arg1: i32) -> (i32, i32, i32) {
    %c0_i32 = arith.constant 0 : i32
    %c0_i32_0 = arith.constant 0 : i32
    %c0_i32_1 = arith.constant 0 : i32
    return %arg0, %c0_i32, %c0_i32_0 : i32, i32, i32
  }
}

</mosaic_0001>

<bundles_post_ra>
// kernel: tpu_custom_call.1
= control target key start
LH: loop header
LB: loop body
LE: loop exit
PB: predicated region body
PF: predicated region fallthrough
CT: control target
= control target key end

     0   :  { %s560_s9 = smov 0   ;;  %s562_s10 = smov 0   ;;  %s622_s0 = inlined_call_operand.vmem [shape: s32[32,1], index: 0, kind: input, shape index: {}]   ;;  %s623_s1 = inlined_call_operand.vmem [shape: f32[32,16], index: 1, kind: input, shape index: {}]   ;;  %s624_s2 = inlined_call_operand.vmem [shape: f32[2,5,49], index: 2, kind: output, shape index: {}]  }
   0x1   :  { %s564_s11 = smov 0   ;;  %s566_s12 = smov 0  }
   0x2   :  { %s568_s13 = smov 0  }
   0x3 LB: > { %s21_s14 = sadd.s32 1, %s529_s11  ;;  %s24_s15 = sadd.s32 1, %s533_s12  ;;  %s537_s13 = sphi %s568_s13, %s12_s13   ;;  %s533_s12 = sphi %s566_s12, %s628_s12   ;;  %s529_s11 = sphi %s564_s11, %s627_s11   ;;  %s525_s10 = sphi %s562_s10, %s626_s10   ;;  %s521_s9 = sphi %s560_s9, %s625_s9  }
   0x4   : > { %p22_p0 = scmp.ge.s32.totalorder %s21_s14, 2  ;;  %p431_p1 = scmp.ge.s32.totalorder %s537_s13, 1 }
   0x5   : > { %p148_p2 = scmp.lt.s32.totalorder %s537_s13, 5 }
   0x6   : > { %s630_s14 = smov (%p22_p0, %s21_s14), 0  ;;  %s632_s15 = smov (!%p22_p0, %s24_s15), %s533_s12 }
   0x7   : > { %p149_p3 = pnand %p431_p1, %p148_p2  ;;  %p26_p4 = scmp.ge.s32.totalorder %s632_s15, 2 }
   0x8   : > { %s432_s16 = sshll.u32 (!%p149_p3), %s525_s10, 1  ;;  %p192_p5 = scmp.lt.s32.totalorder (!%p149_p3), %s525_s10, 1 }
   0x9   : > { %s634_s15 = smov (%p26_p4, %s632_s15), 0  ;;  %152 = sbr.rel (%p149_p3) target bundleno = 511 (0x1ff), region = 28 }
   0xa   : > { %s177_s17 = sadd.s32 (!%p149_p3), %s521_s9, %s432_s16  ;;  %p437_p7 = scmp.ne.s32.totalorder (!%p149_p3), %s521_s9, 0 }
   0xb   : > { %p178_p6 = scmp.lt.s32.totalorder (!%p149_p3), %s177_s17, 3 }
  0x10   : > { %s636_s10 = smov (!%p192_p5, %s525_s10), 1  ;;  %s638_s17 = smov (!%p178_p6, %s177_s17), 3 }
  0x11   : > { %s436_s18 = sshll.u32 %s636_s10, 3  ;;  %s433_s19 = sshll.u32 %s638_s17, 3  ;;  %vm200_vm0 = vcmask (!%p437_p7), 397312   ;;  %v539_v0 = vmov (!%p437_p7), 0.0  }
  0x12   : > { %s596_s22 = scalar_lea.vmem %s624_s2, %s436_s18  ;;  %s181_s25 = scalar_lea.vmem %s622_s0, %s433_s19  ;;  %201 = vst.msk [vmem:[#allocation2] sm:$0x1f] (!%p437_p7), %vm200_vm0, %v539_v0 }
  0x13   : > { %s189_s28 = scalar_lea.vmem %s623_s1, %s433_s19  ;;  %199 = sbr.rel (%p437_p7) target bundleno = 26 (0x1a), region = 32 }
  0x1a PF: > { %v204_v1 = vld [vmem:[%s181_s25] sm:$0xff]  ;;  %v540_v3 = vmov 0   ;;  %v541_v4 = vmov 0.0   ;;  %vm542_vm1 = vmmov 0   ;;  %s543_s29 = smov 16   ;;  %s544_s30 = smov 32   ;;  %v205_v8 = vlaneseq }
  0x1b   : > { %v202_v2 = vld [vmem:[%s189_s28] sm:$0xff]  ;;  %496 = vset.pattern.permute.xlu0 %v540_v3  ;;  %445 = vmatprep.subr.mxu0 %v541_v4  ;;  %vm225_vm5 = vcmask 130048   ;;  %vm227_vm6 = vcmask 261120   ;;  %vm229_vm7 = vcmask 392192   ;;  %vm264_vm8 = vcmask 64512   ;;  %p440_p8 = scmp.ne.s32.totalorder %s521_s9, 1 }
  0x1c   : > { %497 = vtanh.f32 %v202_v2  ;;  %208 = vperm.xlu0 %496, %v204_v1   ;;  %447 = vmatprep.mubr.msk.f32.mxu0 %vm542_vm1, %v541_v4  ;;  %v206_v9 = vand.u32 127, %v205_v8  ;;  %v231_v18 = vld [vmem:[#allocation2] sm:$0x1f]  ;;  %vm339_vm9 = vcmask 397312  }
  0x1e   : > { %vm211_vm2 = vcmp.eq.s32.totalorder %v206_v9, 4 }
  0x26   : > { %v498_v5 = vpop.eup %497 }
  0x27   : > { %v215_v6 = vmul.f32 %v498_v5, %v498_v5  ;;  %v216_v7 = vand.u32 2147483647, %v498_v5 }
  0x29   : > { %218 = vrot.lane.b32.xlu0 %v215_v6, %s543_s29  ;;  %222 = vrot.lane.b32.xlu1 %v216_v7, %s544_s30 }
  0x9b   : > { %v209_v10 = vpop.permute.xlu0 %208  ;;  %v223_v12 = vpop.permute.xlu1 %222 }
  0x9c   : > { %vm210_vm3 = vcmp.eq.s32.totalorder %v206_v9, %v209_v10 }
  0x9d   : > { %vm212_vm4 = vmor %vm210_vm3, %vm211_vm2 }
  0x9e   : > { %v438_v11 = vsel %vm212_vm4, 1.0, %v541_v4 }
  0x9f   : > { %232 = vxpose.xlu1.b32.start.end [1/1] (short) (narrow) %v438_v11, 8  ;;  %v219_v13 = vpop.permute.xlu0 %218 }
  0xa0   : > { %v226_v14 = vsel %vm225_vm5, %v498_v5, %v219_v13 }
  0xa1   : > { %v228_v15 = vsel %vm227_vm6, %v226_v14, %v223_v12 }
  0xa2   : > { %v230_v16 = vsel %vm229_vm7, %v228_v15, 1.0 }
  0xa3   : > { %446 = vmatpush3.msra.mxu0 %v230_v16 }
 0x11f   : > { %v248_v17 = vpop.trf.xlu1 }
 0x120   : > { %448 = vmatmul.mubr.msk.f32.vlgmr.msra.gmra.mrb[0].mxu0 %vm264_vm8, %v248_v17 }
 0x1f0   : > { %344 = sbr.rel (%p440_p8) target bundleno = 511 (0x1ff), region = 36 }
 0x1f3   : > { %v334_v19 = vpop.f32.mrb[0].mxu0 }
 0x1f4   : > { %v338_v20 = vadd.f32 %v334_v19, %v231_v18  ;;  %v449_v21 = vpop.f32.mrb[1].mxu0 }
 0x1f6   : > { %340 = vst.msk [vmem:[#allocation2] sm:$0x1f] %vm339_vm9, %v338_v20 }
 0x1fd   : > { %v345_v22 = vld [vmem:[#allocation2] sm:$0x1f] }
 0x1fe   : > { %346 = vst.msk [vmem:[%s596_s22] sm:$0x1f] %vm339_vm9, %v345_v22 }
 0x1ff PF: > { %s12_s13 = sadd.s32 1, %s537_s13   ;;  %s625_s9 = smov %s529_s11 }
 0x200   : > { %p9_p9 = scmp.ge.s32.totalorder %s12_s13, 6   ;;  %s626_s10 = smov %s533_s12 }
 0x201   : > { %s627_s11 = smov %s630_s14  ;;  %s628_s12 = smov %s634_s15 }
 0x202   :  { %11 = sbr.rel (!%p9_p9) target bundleno = 3 (0x3), region = 69 }

</bundles_post_ra>
